<compile_context>
chip_gen: v7x
topology: tpu7x:2x2x1
jax: 0.10.0
libtpu: 0.0.40
codegen_flags: <defaults>
</compile_context>

<pallas_src>
import functools

import jax
import jax.numpy as jnp
from jax.experimental import pallas as pl
from jax.experimental.pallas import tpu as pltpu


# ---------------------------------------------------------------------------
# Kernels
# ---------------------------------------------------------------------------

def _lr_single_pass_kernel(x_ref, w_ref, b_ref, o_ref):
    """Whole vocab in one tile: one streamed pass per row tile, no accumulator."""
    # x_ref: (bm, Vp) VMEM, w_ref: (1, Vp) VMEM (resident), b_ref: (1, 1) SMEM.
    logits = jnp.sum(x_ref[...] * w_ref[...], axis=-1, keepdims=True)  # VPU mul + XLU reduce
    o_ref[...] = (logits + b_ref[0, 0]).astype(o_ref.dtype)


def _lr_reduce_kernel(x_ref, w_ref, b_ref, o_ref, acc_ref, *, bk):
    """Large-vocab path: accumulate partial row sums over the (innermost) vocab axis."""
    k = pl.program_id(1)

    @pl.when(k == 0)
    def _():
        acc_ref[...] = jnp.zeros_like(acc_ref)

    # w_ref holds the full (1, Vp) weight row resident in VMEM; slice the current chunk.
    start = pl.multiple_of(k * bk, bk)
    w_row = w_ref[:, pl.ds(start, bk)]                                  # (1, bk)
    acc_ref[...] += jnp.sum(x_ref[...] * w_row, axis=-1, keepdims=True)

    @pl.when(k == pl.num_programs(1) - 1)
    def _():
        o_ref[...] = (acc_ref[...] + b_ref[0, 0]).astype(o_ref.dtype)


# ---------------------------------------------------------------------------
# Wrapper
# ---------------------------------------------------------------------------

_X_TILE_BYTES = 6 * 1024 * 1024   # per-buffer x tile budget (double-buffered -> 12 MiB)
_MAX_BM = 256                     # keep batch//bm >= 2 on realistic batches (v7x 2-TC split)


def _round_up(n, m):
    return ((n + m - 1) // m) * m


def _cdiv(a, b):
    return -(-a // b)


def _choose_tiles(batch, vocab, max_bk):
    """Pick large, (8,128)-aligned tiles that fit the conservative VMEM budget."""
    vocab_p = _round_up(vocab, 128)
    kt = _cdiv(vocab_p, max_bk)
    bk = _round_up(_cdiv(vocab_p, kt), 128)
    vocab_p = kt * bk

    bm_cap = max(8, (_X_TILE_BYTES // (bk * 4)) // 8 * 8)
    bm = min(_MAX_BM, bm_cap, _round_up(batch, 8))
    batch_p = _round_up(batch, bm)
    return bm, bk, batch_p, vocab_p, kt


@functools.partial(jax.jit, static_argnames=("max_bk",))
def logistic_regression_forward(x, w, b, *, max_bk=8192):
    """Forward pass of LogisticRegression (same semantics as torch nn.Linear(vocab, 1)).

    Args:
      x: (batch, vocab_size) float input (bag-of-words features).
      w: (1, vocab_size) weight, same layout as torch nn.Linear.weight.
      b: (1,) bias.
      max_bk: static cap on the vocab tile width (tunable / test hook).

    Returns:
      (batch, 1) float32 logits.
    """
    batch, vocab = x.shape
    bm, bk, batch_p, vocab_p, kt = _choose_tiles(batch, vocab, max_bk)

    x = x.astype(jnp.float32)
    w_row = w.reshape(1, vocab).astype(jnp.float32)   # keep row layout; no transpose needed
    b_smem = b.reshape(1, 1).astype(jnp.float32)

    # Zero-pad to tile-aligned shapes (zeros do not affect the dot product).
    if (batch_p, vocab_p) != (batch, vocab):
        x = jnp.pad(x, ((0, batch_p - batch), (0, vocab_p - vocab)))
    if vocab_p != vocab:
        w_row = jnp.pad(w_row, ((0, 0), (0, vocab_p - vocab)))

    mt = batch_p // bm

    if kt == 1:
        # Whole vocab in one tile: no reduction axis, no accumulator, no pl.when.
        out = pl.pallas_call(
            _lr_single_pass_kernel,
            out_shape=jax.ShapeDtypeStruct((batch_p, 1), jnp.float32),
            grid_spec=pltpu.PrefetchScalarGridSpec(
                num_scalar_prefetch=0,
                grid=(mt,),
                in_specs=[
                    pl.BlockSpec((bm, vocab_p), lambda i: (i, 0)),        # x row tile
                    pl.BlockSpec((1, vocab_p), lambda i: (0, 0)),         # w row, resident
                    pl.BlockSpec(memory_space=pltpu.MemorySpace.SMEM),    # bias scalar
                ],
                out_specs=pl.BlockSpec((bm, 1), lambda i: (i, 0)),
            ),
            compiler_params=pltpu.CompilerParams(
                dimension_semantics=("parallel",),
            ),
        )(x, w_row, b_smem)
    else:
        # Large vocab: tile the reduction axis (innermost), accumulate in VMEM scratch.
        out = pl.pallas_call(
            functools.partial(_lr_reduce_kernel, bk=bk),
            out_shape=jax.ShapeDtypeStruct((batch_p, 1), jnp.float32),
            grid_spec=pltpu.PrefetchScalarGridSpec(
                num_scalar_prefetch=0,
                grid=(mt, kt),
                in_specs=[
                    pl.BlockSpec((bm, bk), lambda i, k: (i, k)),          # x tile
                    pl.BlockSpec((1, vocab_p), lambda i, k: (0, 0)),      # w row, resident
                    pl.BlockSpec(memory_space=pltpu.MemorySpace.SMEM),    # bias scalar
                ],
                out_specs=pl.BlockSpec((bm, 1), lambda i, k: (i, 0)),
                scratch_shapes=[pltpu.VMEM((bm, 1), jnp.float32)],
            ),
            compiler_params=pltpu.CompilerParams(
                dimension_semantics=("parallel", "arbitrary"),
            ),
        )(x, w_row, b_smem)

    return out[:batch]


# ---------------------------------------------------------------------------
# Demo / correctness check
# ---------------------------------------------------------------------------

if __name__ == "__main__":
    key = jax.random.PRNGKey(0)
    kx, kw, kb = jax.random.split(key, 3)

    # Small, deliberately non-tile-aligned shapes to exercise the padding path.
    batch, vocab_size = 6, 1000

    x = jax.random.normal(kx, (batch, vocab_size), dtype=jnp.float32)
    w = jax.random.normal(kw, (1, vocab_size), dtype=jnp.float32) * 0.02
    b = jax.random.normal(kb, (1,), dtype=jnp.float32) * 0.02

    ref = x @ w.T + b

    # 1) Default config: vocab fits one tile -> single-pass kernel (no reduction axis).
    out1 = jax.block_until_ready(logistic_regression_forward(x, w, b))
    assert out1.shape == (batch, 1)
    assert jnp.allclose(out1, ref, atol=1e-4, rtol=1e-4), "single-pass mismatch vs reference"

    # 2) Force a small vocab tile to exercise the tiled-reduction kernel path too.
    out2 = jax.block_until_ready(logistic_regression_forward(x, w, b, max_bk=256))
    assert out2.shape == (batch, 1)
    assert jnp.allclose(out2, ref, atol=1e-4, rtol=1e-4), "reduction-path mismatch vs reference"

    print("KERNEL_OK")
</pallas_src>

<mosaic_0001>
module attributes {stable_mosaic.version = 11 : i64} {
  func.func @_lr_single_pass_kernel(%arg0: i32, %arg1: memref<8x1024xf32, #tpu.memory_space<vmem>>, %arg2: memref<1x1024xf32, #tpu.memory_space<vmem>>, %arg3: memref<1x1xf32, #tpu.memory_space<smem>>, %arg4: memref<8x1xf32, #tpu.memory_space<vmem>>) attributes {dimension_semantics = [#tpu.dimension_semantics<parallel>], iteration_bounds = array<i64: 1>, scalar_prefetch = 0 : i64, scratch_operands = 0 : i64, tpu.core_type = #tpu.core_type<tc>, window_params = [{transform_indices = @transform_0, window_bounds = array<i64: 8, 1024>}, {pipeline_mode = #tpu.pipeline_mode<synchronous>, transform_indices = @transform_1, window_bounds = array<i64: 1, 1024>}, {transform_indices = @transform_2, window_bounds = array<i64: 1, 1>}, {transform_indices = @transform_3, window_bounds = array<i64: 8, 1>}]} {
    %c0 = arith.constant 0 : index
    %c0_0 = arith.constant 0 : index
    %0 = vector.load %arg1[%c0, %c0_0] : memref<8x1024xf32, #tpu.memory_space<vmem>>, vector<8x1024xf32>
    %c0_1 = arith.constant 0 : index
    %c0_2 = arith.constant 0 : index
    %1 = vector.load %arg2[%c0_1, %c0_2] : memref<1x1024xf32, #tpu.memory_space<vmem>>, vector<1x1024xf32>
    %2 = vector.broadcast %1 : vector<1x1024xf32> to vector<8x1024xf32>
    %3 = arith.mulf %0, %2 : vector<8x1024xf32>
    %cst = arith.constant dense<0.000000e+00> : vector<8xf32>
    %4 = vector.multi_reduction <add>, %3, %cst [1] : vector<8x1024xf32> to vector<8xf32>
    %5 = vector.shape_cast %4 : vector<8xf32> to vector<8x1xf32>
    %c0_3 = arith.constant 0 : index
    %c0_4 = arith.constant 0 : index
    %6 = memref.load %arg3[%c0_3, %c0_4] : memref<1x1xf32, #tpu.memory_space<smem>>
    %7 = vector.broadcast %6 : f32 to vector<8x1xf32>
    %8 = arith.addf %5, %7 : vector<8x1xf32>
    %c0_5 = arith.constant 0 : index
    %c0_6 = arith.constant 0 : index
    %9 = vector.load %arg4[%c0_5, %c0_6] : memref<8x1xf32, #tpu.memory_space<vmem>>, vector<8x1xf32>
    tpu.vector_store %arg4[%c0_5, %c0_6], %8 {strides = array<i32>} : memref<8x1xf32, #tpu.memory_space<vmem>>, vector<8x1xf32>,
    return
  }
  func.func @transform_0(%arg0: i32) -> (i32, i32) {
    %c0_i32 = arith.constant 0 : i32
    %c0_i32_0 = arith.constant 0 : i32
    return %arg0, %c0_i32 : i32, i32
  }
  func.func @transform_1(%arg0: i32) -> (i32, i32) {
    %c0_i32 = arith.constant 0 : i32
    %c0_i32_0 = arith.constant 0 : i32
    %c0_i32_1 = arith.constant 0 : i32
    return %c0_i32, %c0_i32_0 : i32, i32
  }
  func.func @transform_2(%arg0: i32) -> (i32, i32) {
    %c0_i32 = arith.constant 0 : i32
    %c0_i32_0 = arith.constant 0 : i32
    %c0_i32_1 = arith.constant 0 : i32
    return %c0_i32, %c0_i32_0 : i32, i32
  }
  func.func @transform_3(%arg0: i32) -> (i32, i32) {
    %c0_i32 = arith.constant 0 : i32
    %c0_i32_0 = arith.constant 0 : i32
    return %arg0, %c0_i32 : i32, i32
  }
}

</mosaic_0001>

<bundles_post_ra>
// kernel: logistic_regression_forward.1
= control target key start
LH: loop header
LB: loop body
LE: loop exit
PB: predicated region body
PF: predicated region fallthrough
CT: control target
= control target key end

     0   :  { %v25_v0 = vlaneseq  ;;  %vm85_vm0 = vcmask 7168   ;;  %s144_s1 = inlined_call_operand.vmem [shape: f32[1,1024], index: 1, kind: input, shape index: {}]   ;;  %s145_s0 = inlined_call_operand.vmem [shape: f32[8,1024], index: 0, kind: input, shape index: {}]   ;;  %s146_s2 = inlined_call_operand.<no memory space> [shape: f32[1,1], index: 2, kind: input, shape index: {}]   ;;  %s147_s3 = inlined_call_operand.vmem [shape: f32[8,1], index: 3, kind: output, shape index: {}]  }
   0x1   :  { %v23_v2 = vld [vmem:[%s144_s1] sm:$0xff]  ;;  %v16_v8 = vld [vmem:[%s145_s0 + $0x8] sm:$0xff]  ;;  %v17_v9 = vld [vmem:[%s145_s0 + $0x10] sm:$0xff]  ;;  %v83_v42 = vstv %s146_s2 }
   0x2   :  { %v26_v1 = vshrl.u32 %v25_v0, 7  ;;  %v15_v7 = vld [vmem:[%s145_s0] sm:$0xff]  ;;  %v18_v16 = vld [vmem:[%s145_s0 + $0x18] sm:$0xff]  ;;  %v20_v27 = vld [vmem:[%s145_s0 + $0x28] sm:$0xff] }
   0x3   :  { %v19_v22 = vld [vmem:[%s145_s0 + $0x20] sm:$0xff]  ;;  %v21_v31 = vld [vmem:[%s145_s0 + $0x30] sm:$0xff]  ;;  %v22_v35 = vld [vmem:[%s145_s0 + $0x38] sm:$0xff] }
   0x4   :  { %v27_v3 = vsub.s32 0, %v26_v1  ;;  %v31_v4 = vsub.s32 1, %v26_v1  ;;  %v35_v5 = vsub.s32 2, %v26_v1  ;;  %v39_v6 = vsub.s32 3, %v26_v1 }
   0x5   :  { %v43_v10 = vsub.s32 4, %v26_v1  ;;  %v47_v11 = vsub.s32 5, %v26_v1  ;;  %v51_v17 = vsub.s32 6, %v26_v1  ;;  %v55_v24 = vsub.s32 7, %v26_v1 }
   0x6   :  { %v28_v12 = vrot.slane %v23_v2, %v27_v3  ;;  %v32_v13 = vrot.slane %v23_v2, %v31_v4  ;;  %v36_v14 = vrot.slane %v23_v2, %v35_v5  ;;  %v40_v15 = vrot.slane %v23_v2, %v39_v6 }
   0x7   :  { %v44_v18 = vrot.slane %v23_v2, %v43_v10  ;;  %v48_v23 = vrot.slane %v23_v2, %v47_v11  ;;  %v52_v28 = vrot.slane %v23_v2, %v51_v17  ;;  %v56_v32 = vrot.slane %v23_v2, %v55_v24 }
   0x8   :  { %v65_v19 = vmul.f32 %v28_v12, %v15_v7  ;;  %v66_v20 = vmul.f32 %v32_v13, %v16_v8  ;;  %v67_v21 = vmul.f32 %v36_v14, %v17_v9  ;;  %v68_v25 = vmul.f32 %v40_v15, %v18_v16 }
   0x9   :  { %v69_v29 = vmul.f32 %v44_v18, %v19_v22  ;;  %v70_v33 = vmul.f32 %v48_v23, %v20_v27  ;;  %v71_v36 = vmul.f32 %v52_v28, %v21_v31  ;;  %v72_v38 = vmul.f32 %v56_v32, %v22_v35 }
   0xa   :  { %v73_v26 = vadd.f32 %v66_v20, %v65_v19 }
   0xc   :  { %v74_v30 = vadd.f32 %v73_v26, %v67_v21 }
   0xe   :  { %v75_v34 = vadd.f32 %v74_v30, %v68_v25 }
  0x10   :  { %v76_v37 = vadd.f32 %v75_v34, %v69_v29 }
  0x12   :  { %v77_v39 = vadd.f32 %v76_v37, %v70_v33 }
  0x14   :  { %v78_v40 = vadd.f32 %v77_v39, %v71_v36 }
  0x16   :  { %v79_v41 = vadd.f32 %v78_v40, %v72_v38 }
  0x18   :  { %80 = vadd.xlane.f32.xlu0 %v79_v41 }
  0xa5   :  { %v81_v43 = vpop.xlane.xlu0 %80 }
  0xa6   :  { %v84_v44 = vadd.f32 %v83_v42, %v81_v43 }
  0xa8   :  { %86 = vst.msk [vmem:[%s147_s3] sm:$0xff] %vm85_vm0, %v84_v44 }

</bundles_post_ra>
